<compile_context>
chip_gen: v7x
topology: tpu7x:2x2x1
jax: 0.10.0
libtpu: 0.0.40
codegen_flags: <defaults>
</compile_context>

<pallas_src>
import functools

import jax
import jax.numpy as jnp
from jax.experimental import pallas as pl
from jax.experimental.pallas import tpu as pltpu

_INV_SQRT2 = 0.7071067811865476
_SQRT_2_OVER_PI = 0.7978845608028654
_LN_EPS = 1e-5
_MIB = 1024 * 1024


def _round_up(a, b):
    return (a + b - 1) // b * b


def _gelu(h, tanh_approx):
    if tanh_approx:
        # tanh approximation -> EUP slot (separate VLIW slot from the VALU).
        return 0.5 * h * (1.0 + jnp.tanh(_SQRT_2_OVER_PI * (h + 0.044715 * h * h * h)))
    # Exact erf GELU == torch.nn.GELU() default.
    return 0.5 * h * (1.0 + jax.lax.erf(h * _INV_SQRT2))


def _ln_residual(y, x_f32, gamma, beta, valid_e, padded_e):
    """f32 LayerNorm over the (possibly zero-padded) last axis + skip connection."""
    inv_e = 1.0 / float(valid_e)
    # Padded columns of y are exactly zero, so plain sums divided by the valid
    # count give the correct mean.
    mu = jnp.sum(y, axis=-1, keepdims=True) * inv_e
    centered = y - mu
    if padded_e != valid_e:
        col = jax.lax.broadcasted_iota(jnp.int32, y.shape, y.ndim - 1)
        centered = jnp.where(col < valid_e, centered, 0.0)
    var = jnp.sum(centered * centered, axis=-1, keepdims=True) * inv_e
    y_hat = centered * jax.lax.rsqrt(var + _LN_EPS)
    return y_hat * gamma + beta + x_f32


# --------------------------------------------------------------------------
# Kernels
# --------------------------------------------------------------------------
def _mlp_kernel_resident(x_ref, w1_ref, b1_ref, w2_ref, g_ref, beta_ref, o_ref,
                         *, valid_e, padded_e, tanh_gelu):
    """Weights resident in VMEM (DMA'd once); grid = (row_tiles,)."""
    x = x_ref[...]
    h = jnp.dot(x, w1_ref[...], preferred_element_type=jnp.float32)
    h = h + b1_ref[...].astype(jnp.float32)
    h = _gelu(h, tanh_gelu)
    y = jnp.dot(h.astype(w2_ref.dtype), w2_ref[...],
                preferred_element_type=jnp.float32)
    out = _ln_residual(y, x.astype(jnp.float32),
                       g_ref[...].astype(jnp.float32),
                       beta_ref[...].astype(jnp.float32),
                       valid_e, padded_e)
    o_ref[...] = out.astype(o_ref.dtype)


def _mlp_kernel_tiled(x_ref, w1_ref, b1_ref, w2_ref, g_ref, beta_ref, o_ref,
                      acc_ref, *, valid_e, padded_e, tanh_gelu):
    """Hidden dim tiled; grid = (row_tiles [parallel], hidden_chunks [arbitrary])."""
    k = pl.program_id(1)

    @pl.when(k == 0)
    def _():
        acc_ref[...] = jnp.zeros_like(acc_ref)

    # ffw[0] chunk: native-dtype MXU operands, f32 accumulation.
    h = jnp.dot(x_ref[...], w1_ref[...], preferred_element_type=jnp.float32)
    h = h + b1_ref[...].astype(jnp.float32)
    h = _gelu(h, tanh_gelu)

    # ffw[2] chunk, accumulated across hidden chunks in f32.
    acc_ref[...] += jnp.dot(h.astype(w2_ref.dtype), w2_ref[...],
                            preferred_element_type=jnp.float32)

    @pl.when(k == pl.num_programs(1) - 1)
    def _():
        x = x_ref[...]
        out = _ln_residual(acc_ref[...], x.astype(jnp.float32),
                           g_ref[...].astype(jnp.float32),
                           beta_ref[...].astype(jnp.float32),
                           valid_e, padded_e)
        o_ref[...] = out.astype(o_ref.dtype)


# --------------------------------------------------------------------------
# Tile / VMEM planning
# --------------------------------------------------------------------------
def _vmem_capacity_bytes():
    try:
        cap = getattr(pltpu.get_tpu_info(), "vmem_capacity_bytes", None)
        if cap:
            return int(cap)
    except Exception:
        pass
    return 64 * _MIB  # conservative (v7x-sized per-core) fallback


def _plan_tiles(M, E, H, in_dsize, out_dsize, force_mode="auto"):
    cap = _vmem_capacity_bytes()
    # Leave headroom for compiler-internal scratch: ~48 MiB on 64 MiB parts
    # (v7x), ~112 MiB on 128 MiB parts (v5e/v6e).
    vmem_limit = max(32 * _MIB, cap - 16 * _MIB)
    budget = int(vmem_limit * 0.9)

    row_align = {4: 8, 2: 16, 1: 32}.get(in_dsize, 8)
    big_vmem = cap >= 100 * _MIB
    # Roofline: re-streamed weights need tm ~>=650 flops/byte on v6e,
    # ~>=310 on v7x; the resident path only needs tm to amortize step overhead.
    tm_target = 1024 if big_vmem else 512
    tk_target = 1024 if big_vmem else 512

    Ep = _round_up(E, 128)
    tm = min(_round_up(tm_target, row_align), _round_up(M, row_align))

    # ---- weights-resident fast path ------------------------------------
    Hp_res = _round_up(H, 128)

    def resident_bytes(tm_):
        w = (2 * Ep * Hp_res + Hp_res) * in_dsize            # W1 + W2 + b1 (1 copy)
        io = 2 * tm_ * Ep * in_dsize + 2 * tm_ * Ep * out_dsize
        interm = 2 * tm_ * Hp_res * 4 + tm_ * Ep * 4         # f32 hidden temps + y
        return w + io + interm + 8 * Ep * 4

    if force_mode != "tiled":
        tm_res = tm
        while tm_res > 256 and resident_bytes(tm_res) > budget:
            tm_res = max(256, _round_up(tm_res // 2, row_align))
        if force_mode == "resident" or resident_bytes(tm_res) <= budget:
            return dict(mode="resident", tm=tm_res, tk=None, Ep=Ep, Hp=Hp_res,
                        vmem_limit=vmem_limit)

    # ---- hidden-axis tiled path -----------------------------------------
    tk = min(_round_up(tk_target, 128), _round_up(H, 128))

    def tiled_bytes(tm_, tk_):
        x_io = 2 * tm_ * Ep * in_dsize
        out_io = 2 * tm_ * Ep * out_dsize
        w_chunks = 2 * (Ep * tk_ + tk_ * Ep + tk_) * in_dsize
        acc = tm_ * Ep * 4
        interm = 2 * tm_ * tk_ * 4
        return x_io + out_io + w_chunks + acc + interm + 8 * Ep * 4

    # Shrink tk first (step-overhead lever), keep tm large (intensity lever).
    while tk > 256 and tiled_bytes(tm, tk) > budget:
        tk = max(256, _round_up(tk // 2, 128))
    while tm > 256 and tiled_bytes(tm, tk) > budget:
        tm = max(256, _round_up(tm // 2, row_align))
    while tk > 128 and tiled_bytes(tm, tk) > budget:
        tk = max(128, _round_up(tk // 2, 128))
    Hp = _round_up(H, tk)
    return dict(mode="tiled", tm=tm, tk=tk, Ep=Ep, Hp=Hp, vmem_limit=vmem_limit)


# --------------------------------------------------------------------------
# Wrapper
# --------------------------------------------------------------------------
@functools.partial(jax.jit, static_argnames=("tanh_gelu", "force_mode"))
def mlp_forward(x, w1, b1, w2, gamma, beta, *, tanh_gelu=False, force_mode="auto"):
    """x: (B, S, n_emb).  w1: (E, 4E), b1: (4E,), w2: (4E, E).  Returns (B, S, n_emb)."""
    B, S, E = x.shape
    H = w1.shape[1]
    M = B * S

    in_dsize = jnp.dtype(x.dtype).itemsize
    out_dsize = in_dsize
    cfg = _plan_tiles(M, E, H, in_dsize, out_dsize, force_mode)
    tm, Ep, Hp = cfg["tm"], cfg["Ep"], cfg["Hp"]
    Mp = _round_up(M, tm)

    # Zero-pad to lane/sublane-aligned shapes (extra rows/cols are sliced off).
    x2 = x.reshape(M, E)
    if (Mp, Ep) != (M, E):
        x2 = jnp.pad(x2, ((0, Mp - M), (0, Ep - E)))
    w1p = w1 if (Ep, Hp) == (E, H) else jnp.pad(w1, ((0, Ep - E), (0, Hp - H)))
    b1p = (b1 if Hp == H else jnp.pad(b1, (0, Hp - H))).reshape(1, Hp)
    w2p = w2 if (Hp, Ep) == (H, E) else jnp.pad(w2, ((0, Hp - H), (0, Ep - E)))
    g2 = (gamma if Ep == E else jnp.pad(gamma, (0, Ep - E))).reshape(1, Ep)
    beta2 = (beta if Ep == E else jnp.pad(beta, (0, Ep - E))).reshape(1, Ep)

    flops = 4 * Mp * Ep * Hp
    transcendentals = Mp * Hp
    weight_bytes = (2 * Ep * Hp + Hp) * in_dsize
    io_bytes = Mp * Ep * (in_dsize + out_dsize)
    vmem_whole = pl.BlockSpec(memory_space=pltpu.MemorySpace.VMEM)

    if cfg["mode"] == "resident":
        kernel = functools.partial(_mlp_kernel_resident, valid_e=E, padded_e=Ep,
                                   tanh_gelu=tanh_gelu)
        out2 = pl.pallas_call(
            kernel,
            out_shape=jax.ShapeDtypeStruct((Mp, Ep), x.dtype),
            grid_spec=pltpu.PrefetchScalarGridSpec(
                num_scalar_prefetch=0,
                grid=(Mp // tm,),
                in_specs=[
                    pl.BlockSpec((tm, Ep), lambda i: (i, 0)),  # x row tile
                    vmem_whole,                                # W1 resident (DMA'd once)
                    vmem_whole,                                # b1 resident
                    vmem_whole,                                # W2 resident
                    vmem_whole,                                # LN gamma
                    vmem_whole,                                # LN beta
                ],
                out_specs=pl.BlockSpec((tm, Ep), lambda i: (i, 0)),
            ),
            compiler_params=pltpu.CompilerParams(
                dimension_semantics=("parallel",),
                vmem_limit_bytes=cfg["vmem_limit"],
            ),
            cost_estimate=pl.CostEstimate(
                flops=flops, transcendentals=transcendentals,
                bytes_accessed=io_bytes + weight_bytes),
        )(x2, w1p, b1p, w2p, g2, beta2)
    else:
        tk = cfg["tk"]
        kernel = functools.partial(_mlp_kernel_tiled, valid_e=E, padded_e=Ep,
                                   tanh_gelu=tanh_gelu)
        out2 = pl.pallas_call(
            kernel,
            out_shape=jax.ShapeDtypeStruct((Mp, Ep), x.dtype),
            grid_spec=pltpu.PrefetchScalarGridSpec(
                num_scalar_prefetch=0,
                grid=(Mp // tm, Hp // tk),
                in_specs=[
                    pl.BlockSpec((tm, Ep), lambda i, k: (i, 0)),  # x row tile (resident over k)
                    pl.BlockSpec((Ep, tk), lambda i, k: (0, k)),  # W1 hidden chunk
                    pl.BlockSpec((1, tk), lambda i, k: (0, k)),   # b1 hidden chunk
                    pl.BlockSpec((tk, Ep), lambda i, k: (k, 0)),  # W2 hidden chunk
                    vmem_whole,                                   # LN gamma
                    vmem_whole,                                   # LN beta
                ],
                out_specs=pl.BlockSpec((tm, Ep), lambda i, k: (i, 0)),
                scratch_shapes=[pltpu.VMEM((tm, Ep), jnp.float32)],  # f32 accumulator
            ),
            compiler_params=pltpu.CompilerParams(
                dimension_semantics=("parallel", "arbitrary"),
                vmem_limit_bytes=cfg["vmem_limit"],
            ),
            cost_estimate=pl.CostEstimate(
                flops=flops, transcendentals=transcendentals,
                bytes_accessed=io_bytes + weight_bytes * (Mp // tm)),
        )(x2, w1p, b1p, w2p, g2, beta2)

    if (Mp, Ep) != (M, E):
        out2 = out2[:M, :E]
    return out2.reshape(B, S, E)


# --------------------------------------------------------------------------
# Parameters / reference
# --------------------------------------------------------------------------
def init_params(key, n_emb, dtype=jnp.float32):
    """Deterministic synthetic parameters matching the PyTorch module's shapes."""
    k1, k2, k3 = jax.random.split(key, 3)
    h = 4 * n_emb
    # Linear weights stored as (in, out) so the kernel does x @ W directly.
    w1 = (jax.random.normal(k1, (n_emb, h)) / jnp.sqrt(n_emb)).astype(dtype)
    b1 = (0.01 * jax.random.normal(k2, (h,))).astype(dtype)
    w2 = (jax.random.normal(k3, (h, n_emb)) / jnp.sqrt(h)).astype(dtype)
    gamma = jnp.ones((n_emb,), dtype)   # LayerNorm weight init
    beta = jnp.zeros((n_emb,), dtype)   # LayerNorm bias init
    return w1, b1, w2, gamma, beta


def _reference(x, w1, b1, w2, gamma, beta):
    x = x.astype(jnp.float32)
    h = x @ w1.astype(jnp.float32) + b1.astype(jnp.float32)
    h = 0.5 * h * (1.0 + jax.lax.erf(h * _INV_SQRT2))
    y = h @ w2.astype(jnp.float32)
    mu = jnp.mean(y, -1, keepdims=True)
    var = jnp.mean(jnp.square(y - mu), -1, keepdims=True)
    ln = (y - mu) * jax.lax.rsqrt(var + _LN_EPS) * gamma.astype(jnp.float32) \
        + beta.astype(jnp.float32)
    return ln + x


if __name__ == "__main__":
    B, S, n_emb = 2, 8, 32
    key = jax.random.PRNGKey(0)
    kx, kp = jax.random.split(key)

    # float32 path (weights-resident fast path): exact check vs pure-JAX reference.
    x = jax.random.normal(kx, (B, S, n_emb), jnp.float32)
    w1, b1, w2, gamma, beta = init_params(kp, n_emb, jnp.float32)

    out = mlp_forward(x, w1, b1, w2, gamma, beta)
    jax.block_until_ready(out)

    ref_out = _reference(x, w1, b1, w2, gamma, beta)
    assert jnp.allclose(out, ref_out, atol=2e-4, rtol=2e-4), "f32 mismatch (resident path)"

    # Force the hidden-axis-tiled reduction path to keep it covered as well.
    out_tiled = mlp_forward(x, w1, b1, w2, gamma, beta, force_mode="tiled")
    jax.block_until_ready(out_tiled)
    assert jnp.allclose(out_tiled, ref_out, atol=2e-4, rtol=2e-4), "f32 mismatch (tiled path)"

    # bfloat16 path: exercises the native bf16-operand / f32-accumulate MXU route.
    xb = x.astype(jnp.bfloat16)
    pb = tuple(p.astype(jnp.bfloat16) for p in (w1, b1, w2, gamma, beta))
    out_bf16 = mlp_forward(xb, *pb)
    jax.block_until_ready(out_bf16)
    assert jnp.allclose(out_bf16.astype(jnp.float32), ref_out, atol=0.2, rtol=0.2), \
        "bf16 mismatch vs reference"

    print("KERNEL_OK")
</pallas_src>

<mosaic_0001>
module attributes {stable_mosaic.version = 11 : i64} {
  func.func @_mlp_kernel_resident(%arg0: i32, %arg1: memref<16x128xf32, #tpu.memory_space<vmem>>, %arg2: memref<128x128xf32, #tpu.memory_space<vmem>>, %arg3: memref<1x128xf32, #tpu.memory_space<vmem>>, %arg4: memref<128x128xf32, #tpu.memory_space<vmem>>, %arg5: memref<1x128xf32, #tpu.memory_space<vmem>>, %arg6: memref<1x128xf32, #tpu.memory_space<vmem>>, %arg7: memref<16x128xf32, #tpu.memory_space<vmem>>) attributes {dimension_semantics = [#tpu.dimension_semantics<parallel>], iteration_bounds = array<i64: 1>, scalar_prefetch = 0 : i64, scratch_operands = 0 : i64, tpu.core_type = #tpu.core_type<tc>, window_params = [{transform_indices = @transform_0, window_bounds = array<i64: 16, 128>}, {pipeline_mode = #tpu.pipeline_mode<synchronous>, transform_indices = @transform_1, window_bounds = array<i64: 128, 128>}, {pipeline_mode = #tpu.pipeline_mode<synchronous>, transform_indices = @transform_2, window_bounds = array<i64: 1, 128>}, {pipeline_mode = #tpu.pipeline_mode<synchronous>, transform_indices = @transform_3, window_bounds = array<i64: 128, 128>}, {pipeline_mode = #tpu.pipeline_mode<synchronous>, transform_indices = @transform_4, window_bounds = array<i64: 1, 128>}, {pipeline_mode = #tpu.pipeline_mode<synchronous>, transform_indices = @transform_5, window_bounds = array<i64: 1, 128>}, {transform_indices = @transform_6, window_bounds = array<i64: 16, 128>}]} {
    %c0 = arith.constant 0 : index
    %c0_0 = arith.constant 0 : index
    %0 = vector.load %arg1[%c0, %c0_0] : memref<16x128xf32, #tpu.memory_space<vmem>>, vector<16x128xf32>
    %c0_1 = arith.constant 0 : index
    %c0_2 = arith.constant 0 : index
    %1 = vector.load %arg2[%c0_1, %c0_2] : memref<128x128xf32, #tpu.memory_space<vmem>>, vector<128x128xf32>
    %cst = arith.constant dense<0.000000e+00> : vector<16x128xf32>
    %2 = tpu.matmul %0, %1, %cst {dimension_numbers = #tpu.dot_dimension_numbers<[1], [0], [0], [1], [0, 0, 1, 1], [], []>} : vector<16x128xf32>, vector<128x128xf32>, vector<16x128xf32> -> vector<16x128xf32>
    %c0_3 = arith.constant 0 : index
    %c0_4 = arith.constant 0 : index
    %3 = vector.load %arg3[%c0_3, %c0_4] : memref<1x128xf32, #tpu.memory_space<vmem>>, vector<1x128xf32>
    %4 = vector.broadcast %3 : vector<1x128xf32> to vector<16x128xf32>
    %5 = arith.addf %2, %4 : vector<16x128xf32>
    %cst_5 = arith.constant 5.000000e-01 : f32
    %6 = vector.broadcast %cst_5 : f32 to vector<16x128xf32>
    %7 = arith.mulf %6, %5 : vector<16x128xf32>
    %cst_6 = arith.constant 0.707106769 : f32
    %8 = vector.broadcast %cst_6 : f32 to vector<16x128xf32>
    %9 = arith.mulf %5, %8 : vector<16x128xf32>
    %10 = math.erf %9 : vector<16x128xf32>
    %cst_7 = arith.constant 1.000000e+00 : f32
    %11 = vector.broadcast %cst_7 : f32 to vector<16x128xf32>
    %12 = arith.addf %11, %10 : vector<16x128xf32>
    %13 = arith.mulf %7, %12 : vector<16x128xf32>
    %c0_8 = arith.constant 0 : index
    %c0_9 = arith.constant 0 : index
    %14 = vector.load %arg4[%c0_8, %c0_9] : memref<128x128xf32, #tpu.memory_space<vmem>>, vector<128x128xf32>
    %cst_10 = arith.constant dense<0.000000e+00> : vector<16x128xf32>
    %15 = tpu.matmul %13, %14, %cst_10 {dimension_numbers = #tpu.dot_dimension_numbers<[1], [0], [0], [1], [0, 0, 1, 1], [], []>} : vector<16x128xf32>, vector<128x128xf32>, vector<16x128xf32> -> vector<16x128xf32>
    %c0_11 = arith.constant 0 : index
    %c0_12 = arith.constant 0 : index
    %16 = vector.load %arg5[%c0_11, %c0_12] : memref<1x128xf32, #tpu.memory_space<vmem>>, vector<1x128xf32>
    %c0_13 = arith.constant 0 : index
    %c0_14 = arith.constant 0 : index
    %17 = vector.load %arg6[%c0_13, %c0_14] : memref<1x128xf32, #tpu.memory_space<vmem>>, vector<1x128xf32>
    %cst_15 = arith.constant dense<0.000000e+00> : vector<16xf32>
    %18 = vector.multi_reduction <add>, %15, %cst_15 [1] : vector<16x128xf32> to vector<16xf32>
    %19 = vector.shape_cast %18 : vector<16xf32> to vector<16x1xf32>
    %cst_16 = arith.constant 3.125000e-02 : f32
    %20 = vector.broadcast %cst_16 : f32 to vector<16x1xf32>
    %21 = arith.mulf %19, %20 : vector<16x1xf32>
    %22 = vector.broadcast %21 : vector<16x1xf32> to vector<16x128xf32>
    %23 = arith.subf %15, %22 : vector<16x128xf32>
    %24 = tpu.iota {dimensions = array<i32: 1>} : vector<16x128xi32>
    %c32_i32 = arith.constant 32 : i32
    %25 = vector.broadcast %c32_i32 : i32 to vector<16x128xi32>
    %26 = arith.cmpi slt, %24, %25 : vector<16x128xi32>
    %cst_17 = arith.constant 0.000000e+00 : f32
    %27 = vector.broadcast %cst_17 : f32 to vector<16x128xf32>
    %28 = arith.select %26, %23, %27 : vector<16x128xi1>, vector<16x128xf32>
    %29 = arith.mulf %28, %28 : vector<16x128xf32>
    %cst_18 = arith.constant dense<0.000000e+00> : vector<16xf32>
    %30 = vector.multi_reduction <add>, %29, %cst_18 [1] : vector<16x128xf32> to vector<16xf32>
    %31 = vector.shape_cast %30 : vector<16xf32> to vector<16x1xf32>
    %cst_19 = arith.constant 3.125000e-02 : f32
    %32 = vector.broadcast %cst_19 : f32 to vector<16x1xf32>
    %33 = arith.mulf %31, %32 : vector<16x1xf32>
    %cst_20 = arith.constant 9.99999974E-6 : f32
    %34 = vector.broadcast %cst_20 : f32 to vector<16x1xf32>
    %35 = arith.addf %33, %34 : vector<16x1xf32>
    %36 = math.rsqrt %35 : vector<16x1xf32>
    %37 = vector.broadcast %36 : vector<16x1xf32> to vector<16x128xf32>
    %38 = arith.mulf %28, %37 : vector<16x128xf32>
    %39 = vector.broadcast %16 : vector<1x128xf32> to vector<16x128xf32>
    %40 = arith.mulf %38, %39 : vector<16x128xf32>
    %41 = vector.broadcast %17 : vector<1x128xf32> to vector<16x128xf32>
    %42 = arith.addf %40, %41 : vector<16x128xf32>
    %43 = arith.addf %42, %0 : vector<16x128xf32>
    %c0_21 = arith.constant 0 : index
    %c0_22 = arith.constant 0 : index
    %44 = vector.load %arg7[%c0_21, %c0_22] : memref<16x128xf32, #tpu.memory_space<vmem>>, vector<16x128xf32>
    tpu.vector_store %arg7[%c0_21, %c0_22], %43 {strides = array<i32>} : memref<16x128xf32, #tpu.memory_space<vmem>>, vector<16x128xf32>,
    return
  }
  func.func @transform_0(%arg0: i32) -> (i32, i32) {
    %c0_i32 = arith.constant 0 : i32
    %c0_i32_0 = arith.constant 0 : i32
    return %arg0, %c0_i32 : i32, i32
  }
  func.func @transform_1(%arg0: i32) -> (i32, i32) {
    %c0_i32 = arith.constant 0 : i32
    %c0_i32_0 = arith.constant 0 : i32
    %c0_i32_1 = arith.constant 0 : i32
    return %c0_i32, %c0_i32_0 : i32, i32
  }
  func.func @transform_2(%arg0: i32) -> (i32, i32) {
    %c0_i32 = arith.constant 0 : i32
    %c0_i32_0 = arith.constant 0 : i32
    %c0_i32_1 = arith.constant 0 : i32
    return %c0_i32, %c0_i32_0 : i32, i32
  }
  func.func @transform_3(%arg0: i32) -> (i32, i32) {
    %c0_i32 = arith.constant 0 : i32
    %c0_i32_0 = arith.constant 0 : i32
    %c0_i32_1 = arith.constant 0 : i32
    return %c0_i32, %c0_i32_0 : i32, i32
  }
  func.func @transform_4(%arg0: i32) -> (i32, i32) {
    %c0_i32 = arith.constant 0 : i32
    %c0_i32_0 = arith.constant 0 : i32
    %c0_i32_1 = arith.constant 0 : i32
    return %c0_i32, %c0_i32_0 : i32, i32
  }
  func.func @transform_5(%arg0: i32) -> (i32, i32) {
    %c0_i32 = arith.constant 0 : i32
    %c0_i32_0 = arith.constant 0 : i32
    %c0_i32_1 = arith.constant 0 : i32
    return %c0_i32, %c0_i32_0 : i32, i32
  }
  func.func @transform_6(%arg0: i32) -> (i32, i32) {
    %c0_i32 = arith.constant 0 : i32
    %c0_i32_0 = arith.constant 0 : i32
    return %arg0, %c0_i32 : i32, i32
  }
}

</mosaic_0001>

<bundles_post_ra>
// kernel: mlp_forward.1
= control target key start
LH: loop header
LB: loop body
LE: loop exit
PB: predicated region body
PF: predicated region fallthrough
CT: control target
= control target key end

     0   :  { %s618_s1 = inlined_call_operand.vmem [shape: f32[128,128], index: 1, kind: input, shape index: {}]   ;;  %s619_s0 = inlined_call_operand.vmem [shape: f32[16,128], index: 0, kind: input, shape index: {}]   ;;  %s620_s3 = inlined_call_operand.vmem [shape: f32[128,128], index: 3, kind: input, shape index: {}]   ;;  %s621_s2 = inlined_call_operand.vmem [shape: f32[1,128], index: 2, kind: input, shape index: {}]   ;;  %s622_s4 = inlined_call_operand.vmem [shape: f32[1,128], index: 4, kind: input, shape index: {}]   ;;  %s623_s5 = inlined_call_operand.vmem [shape: f32[1,128], index: 5, kind: input, shape index: {}]   ;;  %s624_s6 = inlined_call_operand.vmem [shape: f32[16,128], index: 6, kind: output, shape index: {}]  }
   0x1   :  { %v25_v0 = vld [vmem:[%s618_s1] sm:$0xff]  ;;  %v26_v1 = vld [vmem:[%s618_s1 + $0x8] sm:$0xff]  ;;  %v27_v2 = vld [vmem:[%s618_s1 + $0x10] sm:$0xff] }
   0x2   :  { %v386_v3 = vpack.c.bf16 %v26_v1, %v25_v0  ;;  %v28_v4 = vld [vmem:[%s618_s1 + $0x18] sm:$0xff]  ;;  %v29_v6 = vld [vmem:[%s618_s1 + $0x20] sm:$0xff]  ;;  %v30_v7 = vld [vmem:[%s618_s1 + $0x28] sm:$0xff] }
   0x3   :  { %v390_v5 = vpack.c.bf16 %v28_v4, %v27_v2  ;;  %v394_v8 = vpack.c.bf16 %v30_v7, %v29_v6  ;;  %v31_v9 = vld [vmem:[%s618_s1 + $0x30] sm:$0xff]  ;;  %v32_v10 = vld [vmem:[%s618_s1 + $0x38] sm:$0xff]  ;;  %v520_v11 = vld [vmem:[%s619_s0] sm:$0xff] }
   0x4   :  { %387 = vmatprep.subr.bf16.mxu0 %v386_v3  ;;  %348 = vmatprep.mubr.f32.mxu0 %v520_v11  ;;  %v133_v12 = vld [vmem:[%s620_s3] sm:$0xff]  ;;  %v134_v13 = vld [vmem:[%s620_s3 + $0x8] sm:$0xff]  ;;  %v135_v14 = vld [vmem:[%s620_s3 + $0x10] sm:$0xff]  ;;  %v398_v20 = vpack.c.bf16 %v32_v10, %v31_v9 }
   0x5   :  { %389 = vmatpush3.bf16.msra.mxu0 %v386_v3  ;;  %v418_v15 = vpack.c.bf16 %v134_v13, %v133_v12  ;;  %v136_v16 = vld [vmem:[%s620_s3 + $0x18] sm:$0xff]  ;;  %v137_v18 = vld [vmem:[%s620_s3 + $0x20] sm:$0xff]  ;;  %v138_v19 = vld [vmem:[%s620_s3 + $0x28] sm:$0xff]  ;;  %v234_v3 = vlaneseq }
   0x6   :  { %391 = vmatprep.subr.bf16.mxu0 %v390_v5  ;;  %v422_v17 = vpack.c.bf16 %v136_v16, %v135_v14  ;;  %v33_v21 = vld [vmem:[%s618_s1 + $0x40] sm:$0xff]  ;;  %v34_v22 = vld [vmem:[%s618_s1 + $0x48] sm:$0xff]  ;;  %v426_v23 = vpack.c.bf16 %v138_v19, %v137_v18  ;;  %v35_v25 = vld [vmem:[%s618_s1 + $0x50] sm:$0xff] }
   0x7   :  { %419 = vmatprep.subr.bf16.mxu1 %v418_v15  ;;  %v402_v24 = vpack.c.bf16 %v34_v22, %v33_v21  ;;  %v36_v26 = vld [vmem:[%s618_s1 + $0x58] sm:$0xff]  ;;  %v37_v28 = vld [vmem:[%s618_s1 + $0x60] sm:$0xff]  ;;  %v38_v29 = vld [vmem:[%s618_s1 + $0x68] sm:$0xff]  ;;  %v235_v4 = vand.u32 127, %v234_v3 }
   0x8   :  { %421 = vmatpush3.bf16.msra.mxu1 %v418_v15  ;;  %v406_v27 = vpack.c.bf16 %v36_v26, %v35_v25  ;;  %v410_v30 = vpack.c.bf16 %v38_v29, %v37_v28  ;;  %v39_v31 = vld [vmem:[%s618_s1 + $0x70] sm:$0xff]  ;;  %v40_v32 = vld [vmem:[%s618_s1 + $0x78] sm:$0xff]  ;;  %v568_v34 = vld [vmem:[%s619_s0 + $0x8] sm:$0xff] }
   0x9   :  { %393 = vmatpush3.bf16.msra.mxu0 %v390_v5  ;;  %423 = vmatprep.subr.bf16.mxu1 %v422_v17  ;;  %v414_v33 = vpack.c.bf16 %v40_v32, %v39_v31  ;;  %v139_v35 = vld [vmem:[%s620_s3 + $0x30] sm:$0xff]  ;;  %v140_v36 = vld [vmem:[%s620_s3 + $0x38] sm:$0xff]  ;;  %v141_v38 = vld [vmem:[%s620_s3 + $0x40] sm:$0xff]  ;;  %vm236_vm0 = vcmp.lt.s32.totalorder %v235_v4, 32 }
   0xa   :  { %395 = vmatprep.subr.bf16.mxu0 %v394_v8  ;;  %v430_v37 = vpack.c.bf16 %v140_v36, %v139_v35  ;;  %v142_v39 = vld [vmem:[%s620_s3 + $0x48] sm:$0xff]  ;;  %v143_v41 = vld [vmem:[%s620_s3 + $0x50] sm:$0xff]  ;;  %v144_v42 = vld [vmem:[%s620_s3 + $0x58] sm:$0xff] }
   0xb   :  { %v434_v40 = vpack.c.bf16 %v142_v39, %v141_v38  ;;  %v438_v43 = vpack.c.bf16 %v144_v42, %v143_v41  ;;  %v145_v44 = vld [vmem:[%s620_s3 + $0x60] sm:$0xff]  ;;  %v146_v45 = vld [vmem:[%s620_s3 + $0x68] sm:$0xff]  ;;  %v147_v47 = vld [vmem:[%s620_s3 + $0x70] sm:$0xff] }
   0xc   :  { %425 = vmatpush3.bf16.msra.mxu1 %v422_v17  ;;  %v442_v46 = vpack.c.bf16 %v146_v45, %v145_v44  ;;  %v148_v48 = vld [vmem:[%s620_s3 + $0x78] sm:$0xff]  ;;  %v277_v50 = vld [vmem:[%s621_s2] ss:$0 sm:$0xff] }
   0xd   :  { %397 = vmatpush3.bf16.msra.mxu0 %v394_v8  ;;  %427 = vmatprep.subr.bf16.mxu1 %v426_v23  ;;  %v446_v49 = vpack.c.bf16 %v148_v48, %v147_v47  ;;  %v279_v25 = vld [vmem:[%s623_s5] ss:$0 sm:$0xff] }
   0xe   :  { %399 = vmatprep.subr.bf16.mxu0 %v398_v20 }
  0x10   :  { %429 = vmatpush3.bf16.msra.mxu1 %v426_v23  ;;  %v278_v23 = vld [vmem:[%s622_s4] ss:$0 sm:$0xff] }
  0x11   :  { %401 = vmatpush3.bf16.msra.mxu0 %v398_v20  ;;  %431 = vmatprep.subr.bf16.mxu1 %v430_v37 }
  0x12   :  { %403 = vmatprep.subr.bf16.mxu0 %v402_v24 }
  0x14   :  { %433 = vmatpush3.bf16.msra.mxu1 %v430_v37 }
  0x15   :  { %405 = vmatpush3.bf16.msra.mxu0 %v402_v24  ;;  %435 = vmatprep.subr.bf16.mxu1 %v434_v40 }
  0x16   :  { %407 = vmatprep.subr.bf16.mxu0 %v406_v27 }
  0x18   :  { %437 = vmatpush3.bf16.msra.mxu1 %v434_v40 }
  0x19   :  { %409 = vmatpush3.bf16.msra.mxu0 %v406_v27  ;;  %439 = vmatprep.subr.bf16.mxu1 %v438_v43 }
  0x1a   :  { %411 = vmatprep.subr.bf16.mxu0 %v410_v30 }
  0x1c   :  { %441 = vmatpush3.bf16.msra.mxu1 %v438_v43 }
  0x1d   :  { %413 = vmatpush3.bf16.msra.mxu0 %v410_v30  ;;  %443 = vmatprep.subr.bf16.mxu1 %v442_v46 }
  0x1e   :  { %415 = vmatprep.subr.bf16.mxu0 %v414_v33 }
  0x20   :  { %445 = vmatpush3.bf16.msra.mxu1 %v442_v46 }
  0x21   :  { %417 = vmatpush3.bf16.msra.mxu0 %v414_v33  ;;  %447 = vmatprep.subr.bf16.mxu1 %v446_v49 }
  0x24   :  { %349 = vmatmul.mubr.f32.vlgmr.msra.gmra.mrb[0].mxu0 %v568_v34  ;;  %449 = vmatpush3.bf16.msra.mxu1 %v446_v49 }
  0xf7   :  { %v350_v51 = vpop.f32.mrb[0].mxu0 }
  0xf8   :  { %v120_v52 = vadd.f32 %v350_v51, %v277_v50  ;;  %v114_v53 = vpop.f32.mrb[1].mxu0 }
  0xf9   :  { %v115_v54 = vadd.f32 %v277_v50, %v114_v53 }
  0xfa   :  { %v126_v55 = vmul.f32 0.70710677, %v120_v52  ;;  %v124_v62 = vmul.f32 0.5, %v120_v52 }
  0xfb   :  { %v125_v56 = vmul.f32 0.70710677, %v115_v54  ;;  %v123_v60 = vmul.f32 0.5, %v115_v54 }
  0xfc   :  { %450 = verf.f32 %v126_v55 }
  0xfd   :  { %452 = verf.f32 %v125_v56 }
 0x106   :  { %v451_v57 = vpop.eup %450 }
 0x107   :  { %v453_v58 = vpop.eup %452  ;;  %v130_v59 = vadd.f32 1.0, %v451_v57 }
 0x108   :  { %v129_v61 = vadd.f32 1.0, %v453_v58 }
 0x109   :  { %v132_v0 = vmul.f32 %v130_v59, %v124_v62 }
 0x10a   :  { %v131_v63 = vmul.f32 %v129_v61, %v123_v60 }
 0x10c   :  { %383 = vmatprep.mubr.f32.mxu1 %v131_v63 }
 0x10d   :  { %384 = vmatmul.mubr.f32.vlgmr.msra.gmra.mrb[0].mxu1 %v132_v0 }
 0x1e0   :  { %v385_v1 = vpop.f32.mrb[0].mxu1 }
 0x1e1   :  { %v215_v2 = vpop.f32.mrb[1].mxu1 }
 0x1e2   :  { %226 = vadd.xlane.f32.xlu0 %v215_v2 }
 0x1e6   :  { %228 = vadd.xlane.f32.xlu0 %v385_v1 }
 0x26f   :  { %v227_v5 = vpop.xlane.xlu0 %226 }
 0x270   :  { %v230_v6 = vmul.f32 0.03125, %v227_v5 }
 0x272   :  { %v232_v7 = vsub.f32 %v215_v2, %v230_v6 }
 0x273   :  { %v229_v8 = vpop.xlane.xlu0 %228 }
 0x274   :  { %v231_v9 = vmul.f32 0.03125, %v229_v8  ;;  %v237_v10 = vsel %vm236_vm0, %v232_v7, 0.0 }
 0x275   :  { %v239_v12 = vmul.f32 %v237_v10, %v237_v10 }
 0x276   :  { %v233_v13 = vsub.f32 %v385_v1, %v231_v9 }
 0x277   :  { %241 = vadd.xlane.f32.xlu1 %v239_v12 }
 0x278   :  { %v238_v14 = vsel %vm236_vm0, %v233_v13, 0.0 }
 0x279   :  { %v240_v15 = vmul.f32 %v238_v14, %v238_v14 }
 0x27b   :  { %243 = vadd.xlane.f32.xlu1 %v240_v15 }
 0x304   :  { %v242_v16 = vpop.xlane.xlu1 %241 }
 0x305   :  { %v245_v17 = vmul.f32 0.03125, %v242_v16 }
 0x307   :  { %v247_v18 = vadd.f32 1e-05, %v245_v17 }
 0x308   :  { %v244_v19 = vpop.xlane.xlu1 %243 }
 0x309   :  { %454 = vrsqrt.f32 %v247_v18  ;;  %v246_v20 = vmul.f32 0.03125, %v244_v19 }
 0x30b   :  { %v248_v21 = vadd.f32 1e-05, %v246_v20 }
 0x30d   :  { %456 = vrsqrt.f32 %v248_v21 }
 0x313   :  { %v455_v22 = vpop.eup %454 }
 0x314   :  { %v251_v24 = vmul.f32 %v455_v22, %v237_v10 }
 0x316   :  { %v259_v26 = vmul.f32 %v278_v23, %v251_v24 }
 0x317   :  { %v457_v27 = vpop.eup %456 }
 0x318   :  { %v267_v28 = vadd.f32 %v279_v25, %v259_v26  ;;  %v252_v29 = vmul.f32 %v457_v27, %v238_v14 }
 0x31a   :  { %v269_v30 = vadd.f32 %v267_v28, %v520_v11  ;;  %v260_v31 = vmul.f32 %v278_v23, %v252_v29 }
 0x31c   :  { %271 = vst [vmem:[%s624_s6] sm:$0xff] %v269_v30  ;;  %v268_v32 = vadd.f32 %v279_v25, %v260_v31 }
 0x31e   :  { %v270_v33 = vadd.f32 %v268_v32, %v568_v34 }
 0x320   :  { %272 = vst [vmem:[%s624_s6 + $0x8] sm:$0xff] %v270_v33 }

</bundles_post_ra>
